<compile_context>
chip_gen: v5e
topology: v5e:2x2
jax: 0.10.0
libtpu: 0.0.40
codegen_flags: <defaults>
</compile_context>

<pallas_src>
import math
import functools

import jax
import jax.numpy as jnp
from jax.experimental import pallas as pl
from jax.experimental.pallas import tpu as pltpu

# ---- model config (mirrors ModelArgs(d_model=32, n_layer=1, expand=2)) ----
D_MODEL = 32
EXPAND = 2
D_INNER = EXPAND * D_MODEL          # 64
EPS = 1e-8

PACK = 4                            # tokens packed per 128-lane row
LANES = PACK * D_MODEL              # 128  (input / output lane width)
H_LANES = PACK * D_INNER            # 256  (hidden lane width)


def mamba_block_kernel(x_ref, w1_ref, b1_ref, w2_ref, b2_ref, seg_ref, o_ref,
                       *, approx_gelu):
    f32 = jnp.float32
    bf16 = jnp.bfloat16

    x = x_ref[...].astype(f32)                                  # (TM, 128)

    # --- RMSNorm (scale folded into W1') ---
    # Per-token sum of squares via block-ones matmul (MXU, lane-dense): every lane
    # of token g gets the sum over that token's 32 feature lanes.  Then one fused
    # rsqrt on the EUP.  Garbage rows from a partial last block only affect their
    # own (unwritten) output rows, so no explicit masking is needed.
    sq = (x * x).astype(bf16)
    ss = jnp.dot(sq, seg_ref[...], preferred_element_type=f32)  # (TM, 128)
    inv = jax.lax.rsqrt(ss * (1.0 / D_MODEL) + EPS)             # EUP slot
    xn = (x * inv).astype(bf16)

    # --- linear1 (block-diagonal packed): (TM,128) @ (128,256) + b1' ---
    h = jnp.dot(xn, w1_ref[...], preferred_element_type=f32) + b1_ref[...]

    # --- GELU ---
    if approx_gelu:
        h = jax.nn.gelu(h, approximate=True)                    # tanh form -> EUP
    else:
        # exact erf GELU (matches nn.GELU default, but saturates the VALU slot)
        h = 0.5 * h * (1.0 + jax.lax.erf(h * (1.0 / math.sqrt(2.0))))

    # --- linear2 (block-diagonal packed): (TM,256) @ (256,128) + b2' ---
    y = jnp.dot(h.astype(bf16), w2_ref[...], preferred_element_type=f32) + b2_ref[...]

    # Residual: re-read x_ref (still resident in VMEM) instead of a long-lived temp.
    o_ref[...] = (y + x_ref[...].astype(f32)).astype(o_ref.dtype)


def _build_packed_params(scale, w1, b1, w2, b2):
    """Fold RMSNorm scale into W1, build 4x block-diagonal packed bf16 weights."""
    f32, bf16 = jnp.float32, jnp.bfloat16
    eye = jnp.eye(PACK, dtype=f32)
    w1s = scale.reshape(D_MODEL, 1).astype(f32) * w1.astype(f32)   # diag(scale) @ W1
    w1p = jnp.kron(eye, w1s).astype(bf16)                          # (128, 256)
    w2p = jnp.kron(eye, w2.astype(f32)).astype(bf16)               # (256, 128)
    b1p = jnp.tile(b1.reshape(1, D_INNER).astype(f32), (1, PACK))  # (1, 256) f32
    b2p = jnp.tile(b2.reshape(1, D_MODEL).astype(f32), (1, PACK))  # (1, 128) f32
    # Block-ones matrix for per-token (32-lane segment) sum of squares; exact in bf16.
    seg = jnp.kron(eye, jnp.ones((D_MODEL, D_MODEL), f32)).astype(bf16)  # (128, 128)
    return w1p, b1p, w2p, b2p, seg


@functools.partial(jax.jit, static_argnames=("tm", "approx_gelu"))
def simple_mamba_block(x, scale, w1, b1, w2, b2, *, tm=2048, approx_gelu=True):
    """x: (B, L, d_model).  tm = packed-row tile (each packed row = 4 tokens)."""
    B, L, D = x.shape
    assert D == D_MODEL
    n_tokens = B * L

    w1p, b1p, w2p, b2p, seg = _build_packed_params(scale, w1, b1, w2, b2)

    # ---- pack 4 tokens per 128-lane row (copy-free when B*L % 4 == 0) ----
    x2d = x.reshape(n_tokens, D)
    rem = n_tokens % PACK
    if rem:
        # <=3-token zero-pad fixup only when the token count isn't a multiple of 4.
        x2d = jnp.pad(x2d, ((0, PACK - rem), (0, 0)))
    n_packed = x2d.shape[0] // PACK
    xp = x2d.reshape(n_packed, LANES)

    # Row tile: large (amortize ~0.35us/step), sublane-aligned, capped so the
    # parallel grid keeps >=2 steps whenever possible (v7x megacore sharding).
    half = -(-n_packed // 2)
    tm_eff = min(tm, max(8, ((half + 7) // 8) * 8))
    grid = (pl.cdiv(n_packed, tm_eff),)   # last block may be partial; Pallas masks it

    kern = functools.partial(mamba_block_kernel, approx_gelu=approx_gelu)

    outp = pl.pallas_call(
        kern,
        out_shape=jax.ShapeDtypeStruct((n_packed, LANES), x.dtype),
        grid_spec=pltpu.PrefetchScalarGridSpec(
            num_scalar_prefetch=0,
            grid=grid,
            in_specs=[
                pl.BlockSpec((tm_eff, LANES), lambda i: (i, 0)),     # packed tokens
                pl.BlockSpec((LANES, H_LANES), lambda i: (0, 0)),    # W1' (128,256) bf16
                pl.BlockSpec((1, H_LANES), lambda i: (0, 0)),        # b1' (1,256) f32
                pl.BlockSpec((H_LANES, LANES), lambda i: (0, 0)),    # W2' (256,128) bf16
                pl.BlockSpec((1, LANES), lambda i: (0, 0)),          # b2' (1,128) f32
                pl.BlockSpec((LANES, LANES), lambda i: (0, 0)),      # segment-ones bf16
            ],
            out_specs=pl.BlockSpec((tm_eff, LANES), lambda i: (i, 0)),
        ),
        compiler_params=pltpu.CompilerParams(
            dimension_semantics=("parallel",),
            vmem_limit_bytes=48 * 1024 * 1024),
    )(xp, w1p, b1p, w2p, b2p, seg)

    out2d = outp.reshape(n_packed * PACK, D)
    if rem:
        out2d = out2d[:n_tokens]
    return out2d.reshape(B, L, D)


# ---------------- references ----------------
def reference_exact(x, scale, w1, b1, w2, b2):
    """Faithful to the PyTorch forward: f32, exact erf GELU, x/(norm+eps)."""
    residual = x
    norm = jnp.linalg.norm(x, axis=-1, keepdims=True) / math.sqrt(x.shape[-1])
    xn = scale[0] * x / (norm + EPS)
    h = xn @ w1 + b1[0]
    h = 0.5 * h * (1.0 + jax.lax.erf(h / math.sqrt(2.0)))
    y = h @ w2 + b2[0]
    return y + residual


def reference_matched(x, scale, w1, b1, w2, b2, *, approx_gelu=True):
    """Mirrors the kernel numerics (bf16 MXU operands, rsqrt, tanh GELU)."""
    f32, bf16 = jnp.float32, jnp.bfloat16
    xf = x.astype(f32)
    sq = (xf * xf).astype(bf16).astype(f32)
    ss = jnp.sum(sq, axis=-1, keepdims=True)
    inv = jax.lax.rsqrt(ss * (1.0 / D_MODEL) + EPS)
    xn = (xf * inv).astype(bf16)
    w1s = (scale.reshape(D_MODEL, 1) * w1).astype(bf16)
    h = jnp.dot(xn, w1s, preferred_element_type=f32) + b1[0]
    if approx_gelu:
        h = jax.nn.gelu(h, approximate=True)
    else:
        h = 0.5 * h * (1.0 + jax.lax.erf(h / math.sqrt(2.0)))
    y = jnp.dot(h.astype(bf16), w2.astype(bf16), preferred_element_type=f32) + b2[0]
    return (y + xf).astype(x.dtype)


if __name__ == "__main__":
    key = jax.random.PRNGKey(0)
    k_s, k_w1, k_b1, k_w2, k_b2, k_x, k_x2, k_x3 = jax.random.split(key, 8)

    # deterministic parameters (W stored (in, out), i.e. transposed nn.Linear weight)
    scale = 1.0 + 0.1 * jax.random.normal(k_s, (1, D_MODEL), jnp.float32)
    w1 = jax.random.normal(k_w1, (D_MODEL, D_INNER), jnp.float32) * (1.0 / math.sqrt(D_MODEL))
    b1 = jax.random.normal(k_b1, (1, D_INNER), jnp.float32) * 0.02
    w2 = jax.random.normal(k_w2, (D_INNER, D_MODEL), jnp.float32) * (1.0 / math.sqrt(D_INNER))
    b2 = jax.random.normal(k_b2, (1, D_MODEL), jnp.float32) * 0.02

    def check(x):
        out = jax.block_until_ready(simple_mamba_block(x, scale, w1, b1, w2, b2))
        assert out.shape == x.shape
        ref_m = reference_matched(x, scale, w1, b1, w2, b2)
        ref_e = reference_exact(x, scale, w1, b1, w2, b2)
        assert jnp.allclose(out, ref_m, atol=5e-3, rtol=5e-3), "mismatch vs matched reference"
        assert jnp.allclose(out, ref_e, atol=8e-2, rtol=8e-2), "mismatch vs exact reference"

    # small example: B=2, L=8, d_model=32 (token count divisible by 4 -> no pad/slice)
    check(jax.random.normal(k_x, (2, 8, D_MODEL), jnp.float32))

    # ragged tail: token count not a multiple of the 4-token packing
    check(jax.random.normal(k_x2, (1, 5, D_MODEL), jnp.float32))

    # multi-step grid with a partial last block (exercises Pallas boundary masking)
    check(jax.random.normal(k_x3, (3, 37, D_MODEL), jnp.float32))

    print("KERNEL_OK")
</pallas_src>

<mosaic_0001>
module attributes {stable_mosaic.version = 11 : i64} {
  func.func @mamba_block_kernel(%arg0: i32, %arg1: memref<8x128xf32, #tpu.memory_space<vmem>>, %arg2: memref<128x256xbf16, #tpu.memory_space<vmem>>, %arg3: memref<1x256xf32, #tpu.memory_space<vmem>>, %arg4: memref<256x128xbf16, #tpu.memory_space<vmem>>, %arg5: memref<1x128xf32, #tpu.memory_space<vmem>>, %arg6: memref<128x128xbf16, #tpu.memory_space<vmem>>, %arg7: memref<8x128xf32, #tpu.memory_space<vmem>>) attributes {dimension_semantics = [#tpu.dimension_semantics<parallel>], iteration_bounds = array<i64: 1>, scalar_prefetch = 0 : i64, scratch_operands = 0 : i64, tpu.core_type = #tpu.core_type<tc>, window_params = [{transform_indices = @transform_0, window_bounds = array<i64: 8, 128>}, {pipeline_mode = #tpu.pipeline_mode<synchronous>, transform_indices = @transform_1, window_bounds = array<i64: 128, 256>}, {pipeline_mode = #tpu.pipeline_mode<synchronous>, transform_indices = @transform_2, window_bounds = array<i64: 1, 256>}, {pipeline_mode = #tpu.pipeline_mode<synchronous>, transform_indices = @transform_3, window_bounds = array<i64: 256, 128>}, {pipeline_mode = #tpu.pipeline_mode<synchronous>, transform_indices = @transform_4, window_bounds = array<i64: 1, 128>}, {pipeline_mode = #tpu.pipeline_mode<synchronous>, transform_indices = @transform_5, window_bounds = array<i64: 128, 128>}, {transform_indices = @transform_6, window_bounds = array<i64: 8, 128>}]} {
    %c0 = arith.constant 0 : index
    %c0_0 = arith.constant 0 : index
    %0 = vector.load %arg1[%c0, %c0_0] : memref<8x128xf32, #tpu.memory_space<vmem>>, vector<8x128xf32>
    %1 = arith.mulf %0, %0 : vector<8x128xf32>
    %2 = arith.truncf %1 : vector<8x128xf32> to vector<8x128xbf16>
    %c0_1 = arith.constant 0 : index
    %c0_2 = arith.constant 0 : index
    %3 = vector.load %arg6[%c0_1, %c0_2] : memref<128x128xbf16, #tpu.memory_space<vmem>>, vector<128x128xbf16>
    %cst = arith.constant dense<0.000000e+00> : vector<8x128xf32>
    %4 = tpu.matmul %2, %3, %cst {dimension_numbers = #tpu.dot_dimension_numbers<[1], [0], [0], [1], [0, 0, 1, 1], [], []>} : vector<8x128xbf16>, vector<128x128xbf16>, vector<8x128xf32> -> vector<8x128xf32>
    %cst_3 = arith.constant 3.125000e-02 : f32
    %5 = vector.broadcast %cst_3 : f32 to vector<8x128xf32>
    %6 = arith.mulf %4, %5 : vector<8x128xf32>
    %cst_4 = arith.constant 9.99999993E-9 : f32
    %7 = vector.broadcast %cst_4 : f32 to vector<8x128xf32>
    %8 = arith.addf %6, %7 : vector<8x128xf32>
    %9 = math.rsqrt %8 : vector<8x128xf32>
    %10 = arith.mulf %0, %9 : vector<8x128xf32>
    %11 = arith.truncf %10 : vector<8x128xf32> to vector<8x128xbf16>
    %c0_5 = arith.constant 0 : index
    %c0_6 = arith.constant 0 : index
    %12 = vector.load %arg2[%c0_5, %c0_6] : memref<128x256xbf16, #tpu.memory_space<vmem>>, vector<128x256xbf16>
    %cst_7 = arith.constant dense<0.000000e+00> : vector<8x256xf32>
    %13 = tpu.matmul %11, %12, %cst_7 {dimension_numbers = #tpu.dot_dimension_numbers<[1], [0], [0], [1], [0, 0, 1, 1], [], []>} : vector<8x128xbf16>, vector<128x256xbf16>, vector<8x256xf32> -> vector<8x256xf32>
    %c0_8 = arith.constant 0 : index
    %c0_9 = arith.constant 0 : index
    %14 = vector.load %arg3[%c0_8, %c0_9] : memref<1x256xf32, #tpu.memory_space<vmem>>, vector<1x256xf32>
    %15 = vector.broadcast %14 : vector<1x256xf32> to vector<8x256xf32>
    %16 = arith.addf %13, %15 : vector<8x256xf32>
    %17 = arith.mulf %16, %16 : vector<8x256xf32>
    %18 = arith.mulf %16, %17 : vector<8x256xf32>
    %cst_10 = arith.constant 4.471500e-02 : f32
    %19 = vector.broadcast %cst_10 : f32 to vector<8x256xf32>
    %20 = arith.mulf %19, %18 : vector<8x256xf32>
    %21 = arith.addf %16, %20 : vector<8x256xf32>
    %cst_11 = arith.constant 0.797884583 : f32
    %22 = vector.broadcast %cst_11 : f32 to vector<8x256xf32>
    %23 = arith.mulf %22, %21 : vector<8x256xf32>
    %24 = math.tanh %23 : vector<8x256xf32>
    %cst_12 = arith.constant 1.000000e+00 : f32
    %25 = vector.broadcast %cst_12 : f32 to vector<8x256xf32>
    %26 = arith.addf %25, %24 : vector<8x256xf32>
    %cst_13 = arith.constant 5.000000e-01 : f32
    %27 = vector.broadcast %cst_13 : f32 to vector<8x256xf32>
    %28 = arith.mulf %27, %26 : vector<8x256xf32>
    %29 = arith.mulf %16, %28 : vector<8x256xf32>
    %30 = arith.truncf %29 : vector<8x256xf32> to vector<8x256xbf16>
    %c0_14 = arith.constant 0 : index
    %c0_15 = arith.constant 0 : index
    %31 = vector.load %arg4[%c0_14, %c0_15] : memref<256x128xbf16, #tpu.memory_space<vmem>>, vector<256x128xbf16>
    %cst_16 = arith.constant dense<0.000000e+00> : vector<8x128xf32>
    %32 = tpu.matmul %30, %31, %cst_16 {dimension_numbers = #tpu.dot_dimension_numbers<[1], [0], [0], [1], [0, 0, 1, 1], [], []>} : vector<8x256xbf16>, vector<256x128xbf16>, vector<8x128xf32> -> vector<8x128xf32>
    %c0_17 = arith.constant 0 : index
    %c0_18 = arith.constant 0 : index
    %33 = vector.load %arg5[%c0_17, %c0_18] : memref<1x128xf32, #tpu.memory_space<vmem>>, vector<1x128xf32>
    %34 = vector.broadcast %33 : vector<1x128xf32> to vector<8x128xf32>
    %35 = arith.addf %32, %34 : vector<8x128xf32>
    %c0_19 = arith.constant 0 : index
    %c0_20 = arith.constant 0 : index
    %36 = vector.load %arg1[%c0_19, %c0_20] : memref<8x128xf32, #tpu.memory_space<vmem>>, vector<8x128xf32>
    %37 = arith.addf %35, %36 : vector<8x128xf32>
    %c0_21 = arith.constant 0 : index
    %c0_22 = arith.constant 0 : index
    %38 = vector.load %arg7[%c0_21, %c0_22] : memref<8x128xf32, #tpu.memory_space<vmem>>, vector<8x128xf32>
    tpu.vector_store %arg7[%c0_21, %c0_22], %37 {strides = array<i32>} : memref<8x128xf32, #tpu.memory_space<vmem>>, vector<8x128xf32>,
    return
  }
  func.func @transform_0(%arg0: i32) -> (i32, i32) {
    %c0_i32 = arith.constant 0 : i32
    %c0_i32_0 = arith.constant 0 : i32
    return %arg0, %c0_i32 : i32, i32
  }
  func.func @transform_1(%arg0: i32) -> (i32, i32) {
    %c0_i32 = arith.constant 0 : i32
    %c0_i32_0 = arith.constant 0 : i32
    %c0_i32_1 = arith.constant 0 : i32
    return %c0_i32, %c0_i32_0 : i32, i32
  }
  func.func @transform_2(%arg0: i32) -> (i32, i32) {
    %c0_i32 = arith.constant 0 : i32
    %c0_i32_0 = arith.constant 0 : i32
    %c0_i32_1 = arith.constant 0 : i32
    return %c0_i32, %c0_i32_0 : i32, i32
  }
  func.func @transform_3(%arg0: i32) -> (i32, i32) {
    %c0_i32 = arith.constant 0 : i32
    %c0_i32_0 = arith.constant 0 : i32
    %c0_i32_1 = arith.constant 0 : i32
    return %c0_i32, %c0_i32_0 : i32, i32
  }
  func.func @transform_4(%arg0: i32) -> (i32, i32) {
    %c0_i32 = arith.constant 0 : i32
    %c0_i32_0 = arith.constant 0 : i32
    %c0_i32_1 = arith.constant 0 : i32
    return %c0_i32, %c0_i32_0 : i32, i32
  }
  func.func @transform_5(%arg0: i32) -> (i32, i32) {
    %c0_i32 = arith.constant 0 : i32
    %c0_i32_0 = arith.constant 0 : i32
    %c0_i32_1 = arith.constant 0 : i32
    return %c0_i32, %c0_i32_0 : i32, i32
  }
  func.func @transform_6(%arg0: i32) -> (i32, i32) {
    %c0_i32 = arith.constant 0 : i32
    %c0_i32_0 = arith.constant 0 : i32
    return %arg0, %c0_i32 : i32, i32
  }
}

</mosaic_0001>

<bundles_post_ra>
// kernel: simple_mamba_block.1
= control target key start
LH: loop header
LB: loop body
LE: loop exit
PB: predicated region body
PF: predicated region fallthrough
CT: control target
= control target key end

     0   :  { %s894_s0 = inlined_call_operand.vmem [shape: f32[4,128], index: 0, kind: input, shape index: {}]   ;;  %s895_s1 = inlined_call_operand.vmem [shape: bf16[128,256], index: 1, kind: input, shape index: {}]   ;;  %s896_s2 = inlined_call_operand.vmem [shape: f32[1,256], index: 2, kind: input, shape index: {}]   ;;  %s897_s3 = inlined_call_operand.vmem [shape: bf16[256,128], index: 3, kind: input, shape index: {}]   ;;  %s898_s4 = inlined_call_operand.vmem [shape: f32[1,128], index: 4, kind: input, shape index: {}]   ;;  %s899_s5 = inlined_call_operand.vmem [shape: bf16[128,128], index: 5, kind: input, shape index: {}]   ;;  %s900_s6 = inlined_call_operand.vmem [shape: f32[4,128], index: 6, kind: output, shape index: {}]  }
   0x1   :  { %v633_v0 = vld [vmem:[%s899_s5 + $0x38] sm:$0xff]  ;;  %v632_v1 = vld [vmem:[%s899_s5 + $0x30] sm:$0xff]  ;;  %v631_v8 = vld [vmem:[%s899_s5 + $0x28] sm:$0xff] }
   0x2   :  { %90 = vmatpush.bf16.msra.mxu0 %v633_v0  ;;  %v556_v2 = vld [vmem:[%s895_s1 + $0x70] sm:$0xf]  ;;  %v649_v3 = vld [vmem:[%s895_s1 + $0x74] sm:$0xf0]  ;;  %v648_v4 = vld [vmem:[%s895_s1 + $0x74] sm:$0xf] }
   0x3   :  { %v557_v5 = vor.u32 %v649_v3, %v556_v2  ;;  %v558_v6 = vld [vmem:[%s895_s1 + $0x78] sm:$0xf0]  ;;  %v630_v9 = vld [vmem:[%s899_s5 + $0x20] sm:$0xff]  ;;  %v628_v11 = vld [vmem:[%s899_s5 + $0x10] sm:$0xff] }
   0x4   :  { %v561_v7 = vor.u32 %v648_v4, %v558_v6  ;;  %v629_v10 = vld [vmem:[%s899_s5 + $0x18] sm:$0xff]  ;;  %v627_v12 = vld [vmem:[%s899_s5 + $0x8] sm:$0xff]  ;;  %v744_v13 = vld [vmem:[%s894_s0] sm:$0xff] }
   0x5   :  { %219 = vmatpush.bf16.msra.mxu1 %v557_v5  ;;  %v24_v14 = vmul.f32 %v744_v13, %v744_v13  ;;  %v626_v15 = vld [vmem:[%s899_s5] sm:$0xff]  ;;  %v647_v18 = vld [vmem:[%s895_s1 + $0x64] sm:$0xf0]  ;;  %v550_v21 = vld [vmem:[%s895_s1 + $0x68] sm:$0xf0] }
   0x6   :  { %91 = vmatpush.bf16.msra.mxu0 %v632_v1  ;;  %232 = vmatpush.bf16.msra.mxu2 %v561_v7  ;;  %v548_v17 = vld [vmem:[%s895_s1 + $0x60] sm:$0xf]  ;;  %v646_v19 = vld [vmem:[%s895_s1 + $0x64] sm:$0xf]  ;;  %v540_v23 = vld [vmem:[%s895_s1 + $0x50] sm:$0xf] }
   0x7   :  { %v25_v16 = vpack.c.bf16 %v24_v14, %v24_v14  ;;  %v549_v20 = vor.u32 %v647_v18, %v548_v17  ;;  %v553_v22 = vor.u32 %v646_v19, %v550_v21  ;;  %v645_v24 = vld [vmem:[%s895_s1 + $0x54] sm:$0xf0]  ;;  %v644_v25 = vld [vmem:[%s895_s1 + $0x54] sm:$0xf]  ;;  %v542_v27 = vld [vmem:[%s895_s1 + $0x58] sm:$0xf0] }
   0x8   :  { %v541_v26 = vor.u32 %v645_v24, %v540_v23  ;;  %v545_v28 = vor.u32 %v644_v25, %v542_v27  ;;  %v532_v29 = vld [vmem:[%s895_s1 + $0x40] sm:$0xf]  ;;  %v643_v30 = vld [vmem:[%s895_s1 + $0x44] sm:$0xf0]  ;;  %v642_v31 = vld [vmem:[%s895_s1 + $0x44] sm:$0xf] }
   0x9   :  { %220 = vmatpush.bf16.msra.mxu1 %v549_v20  ;;  %v533_v32 = vor.u32 %v643_v30, %v532_v29  ;;  %v534_v33 = vld [vmem:[%s895_s1 + $0x48] sm:$0xf0]  ;;  %v524_v35 = vld [vmem:[%s895_s1 + $0x30] sm:$0xf]  ;;  %v641_v36 = vld [vmem:[%s895_s1 + $0x34] sm:$0xf0] }
   0xa   :  { %92 = vmatpush.bf16.msra.mxu0 %v631_v8  ;;  %233 = vmatpush.bf16.msra.mxu2 %v553_v22  ;;  %v537_v34 = vor.u32 %v642_v31, %v534_v33  ;;  %v640_v37 = vld [vmem:[%s895_s1 + $0x34] sm:$0xf]  ;;  %v525_v38 = vor.u32 %v641_v36, %v524_v35  ;;  %v526_v39 = vld [vmem:[%s895_s1 + $0x38] sm:$0xf0]  ;;  %v516_v41 = vld [vmem:[%s895_s1 + $0x20] sm:$0xf] }
   0xb   :  { %v529_v40 = vor.u32 %v640_v37, %v526_v39  ;;  %v639_v42 = vld [vmem:[%s895_s1 + $0x24] sm:$0xf0]  ;;  %v638_v43 = vld [vmem:[%s895_s1 + $0x24] sm:$0xf]  ;;  %v518_v45 = vld [vmem:[%s895_s1 + $0x28] sm:$0xf0] }
   0xc   :  { %v517_v44 = vor.u32 %v639_v42, %v516_v41  ;;  %v521_v46 = vor.u32 %v638_v43, %v518_v45  ;;  %v508_v47 = vld [vmem:[%s895_s1 + $0x10] sm:$0xf]  ;;  %v637_v48 = vld [vmem:[%s895_s1 + $0x14] sm:$0xf0]  ;;  %v636_v49 = vld [vmem:[%s895_s1 + $0x14] sm:$0xf] }
   0xd   :  { %221 = vmatpush.bf16.msra.mxu1 %v541_v26  ;;  %v509_v50 = vor.u32 %v637_v48, %v508_v47  ;;  %v510_v51 = vld [vmem:[%s895_s1 + $0x18] sm:$0xf0]  ;;  %v500_v52 = vld [vmem:[%s895_s1] sm:$0xf]  ;;  %v635_v53 = vld [vmem:[%s895_s1 + $0x4] sm:$0xf0] }
   0xe   :  { %93 = vmatpush.bf16.msra.mxu0 %v630_v9  ;;  %234 = vmatpush.bf16.msra.mxu2 %v545_v28  ;;  %v513_v54 = vor.u32 %v636_v49, %v510_v51  ;;  %v634_v55 = vld [vmem:[%s895_s1 + $0x4] sm:$0xf]  ;;  %v502_v56 = vld [vmem:[%s895_s1 + $0x8] sm:$0xf0]  ;;  %v501_v57 = vor.u32 %v635_v53, %v500_v52  ;;  %v657_v59 = vld [vmem:[%s897_s3 + $0x38] sm:$0xff] }
   0xf   :  { %v505_v58 = vor.u32 %v634_v55, %v502_v56  ;;  %397 = vmatpush.bf16.msra.mxu3 %v657_v59  ;;  %v656_v9 = vld [vmem:[%s897_s3 + $0x30] sm:$0xff]  ;;  %v654_v14 = vld [vmem:[%s897_s3 + $0x20] sm:$0xff]  ;;  %v661_v19 = vld [vmem:[%s897_s3 + $0x58] sm:$0xff] }
  0x10   :  { %v662_v17 = vld [vmem:[%s897_s3 + $0x60] sm:$0xff]  ;;  %v652_v18 = vld [vmem:[%s897_s3 + $0x10] sm:$0xff]  ;;  %v651_v20 = vld [vmem:[%s897_s3 + $0x8] sm:$0xff] }
  0x11   :  { %222 = vmatpush.bf16.msra.mxu1 %v533_v32  ;;  %v660_v21 = vld [vmem:[%s897_s3 + $0x50] sm:$0xff]  ;;  %v650_v22 = vld [vmem:[%s897_s3] sm:$0xff]  ;;  %v659_v23 = vld [vmem:[%s897_s3 + $0x48] sm:$0xff] }
  0x12   :  { %94 = vmatpush.bf16.msra.mxu0 %v629_v10  ;;  %235 = vmatpush.bf16.msra.mxu2 %v537_v34  ;;  %v665_v10 = vld [vmem:[%s897_s3 + $0x78] sm:$0xff]  ;;  %v133_v24 = vld [vmem:[%s896_s2] sm:$0x3] }
  0x13   :  { %398 = vmatpush.bf16.msra.mxu3 %v656_v9  ;;  %v658_v25 = vld [vmem:[%s897_s3 + $0x40] sm:$0xff]  ;;  %v135_v26 = vperm.slane %v133_v24, 0  ;;  %v136_v30 = vperm.slane %v133_v24, 1 }
  0x15   :  { %223 = vmatpush.bf16.msra.mxu1 %v525_v38 }
  0x16   :  { %95 = vmatpush.bf16.msra.mxu0 %v628_v11  ;;  %236 = vmatpush.bf16.msra.mxu2 %v529_v40  ;;  %v655_v11 = vld [vmem:[%s897_s3 + $0x28] sm:$0xff] }
  0x17   :  { %399 = vmatpush.bf16.msra.mxu3 %v655_v11 }
  0x19   :  { %224 = vmatpush.bf16.msra.mxu1 %v517_v44 }
  0x1a   :  { %96 = vmatpush.bf16.msra.mxu0 %v627_v12  ;;  %237 = vmatpush.bf16.msra.mxu2 %v521_v46  ;;  %v664_v12 = vld [vmem:[%s897_s3 + $0x70] sm:$0xff] }
  0x1b   :  { %400 = vmatpush.bf16.msra.mxu3 %v654_v14 }
  0x1d   :  { %225 = vmatpush.bf16.msra.mxu1 %v509_v50 }
  0x1e   :  { %97 = vmatpush.bf16.msra.mxu0 %v626_v15  ;;  %238 = vmatpush.bf16.msra.mxu2 %v513_v54  ;;  %v663_v15 = vld [vmem:[%s897_s3 + $0x68] sm:$0xff]  ;;  %v666_v54 = vld [vmem:[%s898_s4] ss:$0 sm:$0xff] }
  0x21   :  { %98 = vmatmul.bf16.vlgmr.msra.gmra.mxu0 %v25_v16  ;;  %226 = vmatpush.bf16.msra.mxu1 %v501_v57  ;;  %v653_v16 = vld [vmem:[%s897_s3 + $0x18] sm:$0xff] }
  0x22   :  { %239 = vmatpush.bf16.msra.mxu2 %v505_v58  ;;  %410 = vmatpush.bf16.msrb.mxu0 %v665_v10 }
  0x23   :  { %401 = vmatpush.bf16.msra.mxu3 %v653_v16 }
  0x26   :  { %411 = vmatpush.bf16.msrb.mxu0 %v664_v12 }
  0x27   :  { %402 = vmatpush.bf16.msra.mxu3 %v652_v18 }
  0x2a   :  { %412 = vmatpush.bf16.msrb.mxu0 %v663_v15 }
  0x2b   :  { %403 = vmatpush.bf16.msra.mxu3 %v651_v20 }
  0x2e   :  { %413 = vmatpush.bf16.msrb.mxu0 %v662_v17 }
  0x2f   :  { %404 = vmatpush.bf16.msra.mxu3 %v650_v22 }
  0x32   :  { %414 = vmatpush.bf16.msrb.mxu0 %v661_v19 }
  0x36   :  { %415 = vmatpush.bf16.msrb.mxu0 %v660_v21 }
  0x3a   :  { %416 = vmatpush.bf16.msrb.mxu0 %v659_v23 }
  0x3e   :  { %417 = vmatpush.bf16.msrb.mxu0 %v658_v25 }
  0x9e   :  { %v99_v60 = vpop.f32.mrf.mxu0 }
  0x9f   :  { %v103_v61 = vmul.f32 0.03125, %v99_v60 }
  0xa1   :  { %v104_v62 = vadd.f32 1e-08, %v103_v61 }
  0xa3   :  { %667 = vrsqrt.f32 %v104_v62  ;;  %vm111_vm1 = vweird.f32 %v104_v62 }
  0xa6   :  { %v101_v63 = vpop.f32.mrf.mxu0 }
  0xa9   :  { %v668_v0 = vpop.eup %667 }
  0xaa   :  { %v106_v1 = vmul.f32 %v668_v0, %v104_v62  ;;  %vm112_vm0 = vweird.f32 %v668_v0 }
  0xab   :  { %vm113_vm2 = vmor %vm111_vm1, %vm112_vm0 }
  0xac   :  { %v107_v2 = vmul.f32 %v668_v0, %v106_v1 }
  0xae   :  { %v108_v3 = vmul.f32 0.5, %v107_v2 }
  0xb0   :  { %v109_v4 = vsub.f32 1.5, %v108_v3 }
  0xb2   :  { %v110_v5 = vmul.f32 %v668_v0, %v109_v4 }
  0xb4   :  { %v114_v6 = vsel %vm113_vm2, %v668_v0, %v110_v5 }
  0xb5   :  { %v115_v7 = vmul.f32 %v114_v6, %v744_v13 }
  0xb7   :  { %v116_v8 = vpack.c.bf16 %v115_v7, %v115_v7 }
  0xb9   :  { %227 = vmatmul.bf16.vlgmr.msra.gmra.mxu1 %v116_v8  ;;  %240 = vmatmul.bf16.vlgmr.msra.gmra.mxu2 %v116_v8 }
 0x136   :  { %v228_v27 = vpop.f32.mrf.mxu1 }
 0x137   :  { %v229_v28 = vadd.f32 %v228_v27, %v135_v26 }
 0x139   :  { %v245_v29 = vmul.f32 %v229_v28, %v229_v28 }
 0x13b   :  { %v247_v31 = vmul.f32 %v245_v29, %v229_v28 }
 0x13c   :  { %v241_v32 = vpop.f32.mrf.mxu2 }
 0x13d   :  { %v249_v33 = vmul.f32 0.044715, %v247_v31  ;;  %v242_v34 = vadd.f32 %v241_v32, %v136_v30 }
 0x13e   :  { %v230_v35 = vpop.f32.mrf.mxu1 }
 0x13f   :  { %v246_v36 = vmul.f32 %v242_v34, %v242_v34  ;;  %v251_v37 = vadd.f32 %v249_v33, %v229_v28 }
 0x141   :  { %v248_v38 = vmul.f32 %v246_v36, %v242_v34  ;;  %v253_v39 = vmul.f32 0.7978846, %v251_v37 }
 0x143   :  { %v250_v40 = vmul.f32 0.044715, %v248_v38  ;;  %669 = vtanh.f32 %v253_v39 }
 0x144   :  { %v243_v41 = vpop.f32.mrf.mxu2 }
 0x145   :  { %v252_v42 = vadd.f32 %v250_v40, %v242_v34 }
 0x147   :  { %v254_v43 = vmul.f32 0.7978846, %v252_v42 }
 0x149   :  { %v670_v44 = vpop.eup %669  ;;  %671 = vtanh.f32 %v254_v43 }
 0x14a   :  { %v257_v45 = vadd.f32 1.0, %v670_v44 }
 0x14c   :  { %v259_v46 = vmul.f32 0.5, %v257_v45 }
 0x14e   :  { %v261_v47 = vmul.f32 %v259_v46, %v229_v28 }
 0x14f   :  { %v672_v48 = vpop.eup %671 }
 0x150   :  { %v263_v49 = vpack.c.bf16 %v261_v47, %v261_v47  ;;  %v258_v50 = vadd.f32 1.0, %v672_v48 }
 0x152   :  { %405 = vmatmul.bf16.vlgmr.msra.gmra.mxu3 %v263_v49  ;;  %v260_v51 = vmul.f32 0.5, %v258_v50 }
 0x154   :  { %v262_v52 = vmul.f32 %v260_v51, %v242_v34 }
 0x156   :  { %v264_v53 = vpack.c.bf16 %v262_v52, %v262_v52 }
 0x158   :  { %418 = vmatmul.bf16.vlgmr.msrb.gmra.mxu0 %v264_v53 }
 0x1d5   :  { %v406_v55 = vpop.f32.mrf.mxu3  ;;  %v419_v56 = vpop.f32.mrf.mxu0 }
 0x1d6   :  { %v407_v57 = vadd.f32 %v666_v54, %v406_v55 }
 0x1d8   :  { %v420_v58 = vadd.f32 %v419_v56, %v407_v57 }
 0x1da   :  { %v423_v59 = vadd.f32 %v420_v58, %v744_v13 }
 0x1dc   :  { %424 = vst [vmem:[#allocation2] sm:$0xff] %v423_v59 }
 0x1dd   :  { %v408_v60 = vpop.f32.mrf.mxu3  ;;  %v421_v61 = vpop.f32.mrf.mxu0 }
 0x1e3   :  { %v443_v62 = vld [vmem:[#allocation2] sm:$0xf] }
 0x1e4   :  { %444 = vst [vmem:[%s900_s6] sm:$0xf] %v443_v62 }

</bundles_post_ra>
